<compile_context>
chip_gen: v5e
topology: v5e:2x2
jax: 0.10.0
libtpu: 0.0.40
codegen_flags: <defaults>
</compile_context>

<pallas_src>
import jax
import jax.numpy as jnp
from jax import lax
from jax.experimental import pallas as pl
from jax.experimental.pallas import tpu as pltpu

HEBBIAN_LR = 0.01
HEBBIAN_DECAY = 0.99


def _linear_t(x, w):
    # x: (B, In), w: (Out, In) -> x @ w.T : (B, Out)   (MXU matmul, no transpose op)
    return lax.dot_general(x, w, (((1,), (1,)), ((), ())),
                           preferred_element_type=jnp.float32)


def _outer(a_row, b_row):
    # a_row: (1, M), b_row: (1, N) -> outer product (M, N)  (K=1 MXU contraction)
    return lax.dot_general(a_row, b_row, (((0,), (0,)), ((), ())),
                           preferred_element_type=jnp.float32)


def flipflop_kernel(
    x_ref, h_ref,
    wjkx_ref, wjkh_ref, bjk_ref,
    wout_ref, bout_ref,
    tjkx_ref, tjkh_ref,
    # outputs
    out_ref, newh_ref,
    ntjkx_ref, ntjkh_ref,
    nwjkx_ref, nwjkh_ref,
):
    # Load each ref exactly once; all math kept in f32 regardless of storage dtype.
    x = x_ref[...].astype(jnp.float32)
    h = h_ref[...].astype(jnp.float32)
    wjkx = wjkx_ref[...]
    wjkh = wjkh_ref[...]
    tjkx = tjkx_ref[...].astype(jnp.float32)
    tjkh = tjkh_ref[...].astype(jnp.float32)

    B = x.shape[0]
    H = h.shape[1]

    # ---- Fused J/K gates: one pair of MXU matmuls + one sigmoid over (B, 2H). ----
    logits = (_linear_t(x, wjkx) + _linear_t(h, wjkh)
              + bjk_ref[...].astype(jnp.float32))
    g = jax.nn.sigmoid(logits)                               # (B, 2H) = [J | K]

    # ---- Hebbian trace update (f32), fused form:
    #   (t + lr*outer(mean_g, mean_v)) * decay == t*decay + outer(sum_g*scale, sum_v)
    #   with scale = lr*decay / B^2.  Two stacked outers cover both J and K rows.
    g_sum = jnp.sum(g, axis=0, keepdims=True)                # (1, 2H)
    x_sum = jnp.sum(x, axis=0, keepdims=True)                # (1, In)
    h_sum = jnp.sum(h, axis=0, keepdims=True)                # (1, H)
    scale = HEBBIAN_LR * HEBBIAN_DECAY / (B * B)
    g_scaled = g_sum * scale

    ntjkx = tjkx * HEBBIAN_DECAY + _outer(g_scaled, x_sum)   # (2H, In)
    ntjkh = tjkh * HEBBIAN_DECAY + _outer(g_scaled, h_sum)   # (2H, H)
    ntjkx_ref[...] = ntjkx.astype(ntjkx_ref.dtype)
    ntjkh_ref[...] = ntjkh.astype(ntjkh_ref.dtype)
    nwjkx_ref[...] = (wjkx.astype(jnp.float32) + ntjkx).astype(nwjkx_ref.dtype)
    nwjkh_ref[...] = (wjkh.astype(jnp.float32) + ntjkh).astype(nwjkh_ref.dtype)

    # ---- Flip-flop state update + output projection. ----
    j = g[:, :H]
    k = g[:, H:]
    new_h = j * (1.0 - h) + (1.0 - k) * h
    newh_ref[...] = new_h.astype(newh_ref.dtype)
    out_ref[...] = (_linear_t(new_h, wout_ref[...])
                    + bout_ref[...].astype(jnp.float32)).astype(out_ref.dtype)


@jax.jit
def flipflop_forward(x, h, params, traces):
    """Returns (output, new_h, new_traces_dict, new_weights_dict)."""
    B, In = x.shape
    H = params["wjh"].shape[0]
    O = params["wout"].shape[0]
    dt = x.dtype
    wdt = params["wjx"].dtype

    # Pack J/K along the output (sublane) axis; pre-sum the x/h biases per gate.
    w_jk_x = jnp.concatenate([params["wjx"], params["wkx"]], axis=0)        # (2H, In)
    w_jk_h = jnp.concatenate([params["wjh"], params["wkh"]], axis=0)        # (2H, H)
    b_jk = jnp.concatenate([params["bjx"] + params["bjh"],
                            params["bkx"] + params["bkh"]], axis=0).reshape(1, 2 * H)
    t_jk_x = jnp.concatenate([traces["tjx"], traces["tkx"]], axis=0)        # (2H, In)
    t_jk_h = jnp.concatenate([traces["tjh"], traces["tkh"]], axis=0)        # (2H, H)

    inputs = (
        x, h,
        w_jk_x, w_jk_h, b_jk,
        params["wout"], params["bout"].reshape(1, -1),
        t_jk_x, t_jk_h,
    )
    out_shapes = (
        jax.ShapeDtypeStruct((B, O), dt),        # 0: output
        jax.ShapeDtypeStruct((B, H), dt),        # 1: new_h
        jax.ShapeDtypeStruct((2 * H, In), wdt),  # 2: new stacked hebb_trace_x (J|K)
        jax.ShapeDtypeStruct((2 * H, H), wdt),   # 3: new stacked hebb_trace_h (J|K)
        jax.ShapeDtypeStruct((2 * H, In), wdt),  # 4: updated stacked W_x      (J|K)
        jax.ShapeDtypeStruct((2 * H, H), wdt),   # 5: updated stacked W_h      (J|K)
    )
    vmem = pl.BlockSpec(memory_space=pltpu.MemorySpace.VMEM)
    results = pl.pallas_call(
        flipflop_kernel,
        out_shape=out_shapes,
        in_specs=[vmem] * len(inputs),
        out_specs=tuple([vmem] * len(out_shapes)),
        # PyTorch mutates traces / weight.data in place: alias inputs onto the
        # updated outputs so no extra HBM buffers are allocated for writeback.
        input_output_aliases={7: 2, 8: 3, 2: 4, 3: 5},
    )(*inputs)

    output, new_h, nt_x, nt_h, nw_x, nw_h = results
    new_traces = {"tjx": nt_x[:H], "tkx": nt_x[H:],
                  "tjh": nt_h[:H], "tkh": nt_h[H:]}
    new_weights = {"wjx": nw_x[:H], "wkx": nw_x[H:],
                   "wjh": nw_h[:H], "wkh": nw_h[H:]}
    return output, new_h, new_traces, new_weights


def _reference_forward(x, h, params, traces):
    """Pure-JAX reference mirroring the PyTorch module exactly."""
    def lin(v, w, b):
        return v @ w.T + b

    j = jax.nn.sigmoid(lin(x, params["wjx"], params["bjx"])
                       + lin(h, params["wjh"], params["bjh"]))
    ntjx = (traces["tjx"] + HEBBIAN_LR * jnp.outer(j.mean(0), x.mean(0))) * HEBBIAN_DECAY
    ntjh = (traces["tjh"] + HEBBIAN_LR * jnp.outer(j.mean(0), h.mean(0))) * HEBBIAN_DECAY

    k = jax.nn.sigmoid(lin(x, params["wkx"], params["bkx"])
                       + lin(h, params["wkh"], params["bkh"]))
    ntkx = (traces["tkx"] + HEBBIAN_LR * jnp.outer(k.mean(0), x.mean(0))) * HEBBIAN_DECAY
    ntkh = (traces["tkh"] + HEBBIAN_LR * jnp.outer(k.mean(0), h.mean(0))) * HEBBIAN_DECAY

    new_h = j * (1.0 - h) + (1.0 - k) * h
    output = lin(new_h, params["wout"], params["bout"])
    new_traces = {"tjx": ntjx, "tjh": ntjh, "tkx": ntkx, "tkh": ntkh}
    new_weights = {"wjx": params["wjx"] + ntjx, "wjh": params["wjh"] + ntjh,
                   "wkx": params["wkx"] + ntkx, "wkh": params["wkh"] + ntkh}
    return output, new_h, new_traces, new_weights


if __name__ == "__main__":
    B, INPUT, HIDDEN, OUTPUT = 8, 16, 32, 16
    dtype = jnp.float32

    key = jax.random.PRNGKey(0)
    ks = jax.random.split(key, 12)

    def u(k, shape, fan_in):
        bound = 1.0 / jnp.sqrt(fan_in)
        return jax.random.uniform(k, shape, dtype, minval=-bound, maxval=bound)

    params = {
        "wjx": u(ks[0], (HIDDEN, INPUT), INPUT),   "bjx": u(ks[1], (HIDDEN,), INPUT),
        "wjh": u(ks[2], (HIDDEN, HIDDEN), HIDDEN), "bjh": u(ks[3], (HIDDEN,), HIDDEN),
        "wkx": u(ks[4], (HIDDEN, INPUT), INPUT),   "bkx": u(ks[5], (HIDDEN,), INPUT),
        "wkh": u(ks[6], (HIDDEN, HIDDEN), HIDDEN), "bkh": u(ks[7], (HIDDEN,), HIDDEN),
        "wout": u(ks[8], (OUTPUT, HIDDEN), HIDDEN), "bout": u(ks[9], (OUTPUT,), HIDDEN),
    }
    # Hebbian traces start at zero, as in the module __init__.
    traces = {
        "tjx": jnp.zeros((HIDDEN, INPUT), dtype),
        "tjh": jnp.zeros((HIDDEN, HIDDEN), dtype),
        "tkx": jnp.zeros((HIDDEN, INPUT), dtype),
        "tkh": jnp.zeros((HIDDEN, HIDDEN), dtype),
    }

    x = jax.random.normal(ks[10], (B, INPUT), dtype)
    h = jax.random.normal(ks[11], (B, HIDDEN), dtype)

    out, new_h, new_tr, new_w = flipflop_forward(x, h, params, traces)
    jax.block_until_ready((out, new_h, new_tr, new_w))

    # Verify against pure-JAX reference.
    r_out, r_new_h, r_tr, r_w = _reference_forward(x, h, params, traces)
    assert jnp.allclose(out, r_out, atol=1e-5, rtol=1e-5)
    assert jnp.allclose(new_h, r_new_h, atol=1e-5, rtol=1e-5)
    for name in new_tr:
        assert jnp.allclose(new_tr[name], r_tr[name], atol=1e-5, rtol=1e-5)
    for name in new_w:
        assert jnp.allclose(new_w[name], r_w[name], atol=1e-5, rtol=1e-5)

    print("KERNEL_OK")
</pallas_src>

<mosaic_0001>
module attributes {stable_mosaic.version = 11 : i64} {
  func.func @flipflop_kernel(%arg0: memref<8x16xf32, #tpu.memory_space<vmem>>, %arg1: memref<8x32xf32, #tpu.memory_space<vmem>>, %arg2: memref<64x16xf32, #tpu.memory_space<vmem>>, %arg3: memref<64x32xf32, #tpu.memory_space<vmem>>, %arg4: memref<1x64xf32, #tpu.memory_space<vmem>>, %arg5: memref<16x32xf32, #tpu.memory_space<vmem>>, %arg6: memref<1x16xf32, #tpu.memory_space<vmem>>, %arg7: memref<64x16xf32, #tpu.memory_space<vmem>>, %arg8: memref<64x32xf32, #tpu.memory_space<vmem>>, %arg9: memref<8x16xf32, #tpu.memory_space<vmem>>, %arg10: memref<8x32xf32, #tpu.memory_space<vmem>>, %arg11: memref<64x16xf32, #tpu.memory_space<vmem>>, %arg12: memref<64x32xf32, #tpu.memory_space<vmem>>, %arg13: memref<64x16xf32, #tpu.memory_space<vmem>>, %arg14: memref<64x32xf32, #tpu.memory_space<vmem>>) attributes {dimension_semantics = [], scalar_prefetch = 0 : i64, scratch_operands = 0 : i64, tpu.core_type = #tpu.core_type<tc>} {
    %c0 = arith.constant 0 : index
    %c0_0 = arith.constant 0 : index
    %0 = vector.load %arg0[%c0, %c0_0] : memref<8x16xf32, #tpu.memory_space<vmem>>, vector<8x16xf32>
    %c0_1 = arith.constant 0 : index
    %c0_2 = arith.constant 0 : index
    %1 = vector.load %arg1[%c0_1, %c0_2] : memref<8x32xf32, #tpu.memory_space<vmem>>, vector<8x32xf32>
    %c0_3 = arith.constant 0 : index
    %c0_4 = arith.constant 0 : index
    %2 = vector.load %arg2[%c0_3, %c0_4] : memref<64x16xf32, #tpu.memory_space<vmem>>, vector<64x16xf32>
    %c0_5 = arith.constant 0 : index
    %c0_6 = arith.constant 0 : index
    %3 = vector.load %arg3[%c0_5, %c0_6] : memref<64x32xf32, #tpu.memory_space<vmem>>, vector<64x32xf32>
    %c0_7 = arith.constant 0 : index
    %c0_8 = arith.constant 0 : index
    %4 = vector.load %arg7[%c0_7, %c0_8] : memref<64x16xf32, #tpu.memory_space<vmem>>, vector<64x16xf32>
    %c0_9 = arith.constant 0 : index
    %c0_10 = arith.constant 0 : index
    %5 = vector.load %arg8[%c0_9, %c0_10] : memref<64x32xf32, #tpu.memory_space<vmem>>, vector<64x32xf32>
    %cst = arith.constant dense<0.000000e+00> : vector<8x64xf32>
    %6 = tpu.matmul %0, %2, %cst {dimension_numbers = #tpu.dot_dimension_numbers<[1], [1], [0], [0], [0, 0, 1, 0], [], []>} : vector<8x16xf32>, vector<64x16xf32>, vector<8x64xf32> -> vector<8x64xf32>
    %cst_11 = arith.constant dense<0.000000e+00> : vector<8x64xf32>
    %7 = tpu.matmul %1, %3, %cst_11 {dimension_numbers = #tpu.dot_dimension_numbers<[1], [1], [0], [0], [0, 0, 1, 0], [], []>} : vector<8x32xf32>, vector<64x32xf32>, vector<8x64xf32> -> vector<8x64xf32>
    %8 = arith.addf %6, %7 : vector<8x64xf32>
    %c0_12 = arith.constant 0 : index
    %c0_13 = arith.constant 0 : index
    %9 = vector.load %arg4[%c0_12, %c0_13] : memref<1x64xf32, #tpu.memory_space<vmem>>, vector<1x64xf32>
    %10 = vector.broadcast %9 : vector<1x64xf32> to vector<8x64xf32>
    %11 = arith.addf %8, %10 : vector<8x64xf32>
    %12 = arith.negf %11 : vector<8x64xf32>
    %13 = math.exp %12 : vector<8x64xf32>
    %cst_14 = arith.constant 1.000000e+00 : f32
    %14 = vector.broadcast %cst_14 : f32 to vector<8x64xf32>
    %15 = arith.addf %14, %13 : vector<8x64xf32>
    %16 = arith.divf %14, %15 : vector<8x64xf32>
    %cst_15 = arith.constant dense<0.000000e+00> : vector<64xf32>
    %17 = vector.multi_reduction <add>, %16, %cst_15 [0] : vector<8x64xf32> to vector<64xf32>
    %18 = vector.shape_cast %17 : vector<64xf32> to vector<1x64xf32>
    %cst_16 = arith.constant dense<0.000000e+00> : vector<16xf32>
    %19 = vector.multi_reduction <add>, %0, %cst_16 [0] : vector<8x16xf32> to vector<16xf32>
    %20 = vector.shape_cast %19 : vector<16xf32> to vector<1x16xf32>
    %cst_17 = arith.constant dense<0.000000e+00> : vector<32xf32>
    %21 = vector.multi_reduction <add>, %1, %cst_17 [0] : vector<8x32xf32> to vector<32xf32>
    %22 = vector.shape_cast %21 : vector<32xf32> to vector<1x32xf32>
    %cst_18 = arith.constant 1.54687499E-4 : f32
    %23 = vector.broadcast %cst_18 : f32 to vector<1x64xf32>
    %24 = arith.mulf %18, %23 : vector<1x64xf32>
    %cst_19 = arith.constant 9.900000e-01 : f32
    %25 = vector.broadcast %cst_19 : f32 to vector<64x16xf32>
    %26 = arith.mulf %4, %25 : vector<64x16xf32>
    %cst_20 = arith.constant dense<0.000000e+00> : vector<64x16xf32>
    %27 = tpu.matmul %24, %20, %cst_20 {dimension_numbers = #tpu.dot_dimension_numbers<[0], [0], [1], [1], [0, 1, 1, 1], [], []>} : vector<1x64xf32>, vector<1x16xf32>, vector<64x16xf32> -> vector<64x16xf32>
    %28 = arith.addf %26, %27 : vector<64x16xf32>
    %cst_21 = arith.constant 9.900000e-01 : f32
    %29 = vector.broadcast %cst_21 : f32 to vector<64x32xf32>
    %30 = arith.mulf %5, %29 : vector<64x32xf32>
    %cst_22 = arith.constant dense<0.000000e+00> : vector<64x32xf32>
    %31 = tpu.matmul %24, %22, %cst_22 {dimension_numbers = #tpu.dot_dimension_numbers<[0], [0], [1], [1], [0, 1, 1, 1], [], []>} : vector<1x64xf32>, vector<1x32xf32>, vector<64x32xf32> -> vector<64x32xf32>
    %32 = arith.addf %30, %31 : vector<64x32xf32>
    %c0_23 = arith.constant 0 : index
    %c0_24 = arith.constant 0 : index
    %33 = vector.load %arg11[%c0_23, %c0_24] : memref<64x16xf32, #tpu.memory_space<vmem>>, vector<64x16xf32>
    tpu.vector_store %arg11[%c0_23, %c0_24], %28 {strides = array<i32>} : memref<64x16xf32, #tpu.memory_space<vmem>>, vector<64x16xf32>,
    %c0_25 = arith.constant 0 : index
    %c0_26 = arith.constant 0 : index
    %34 = vector.load %arg12[%c0_25, %c0_26] : memref<64x32xf32, #tpu.memory_space<vmem>>, vector<64x32xf32>
    tpu.vector_store %arg12[%c0_25, %c0_26], %32 {strides = array<i32>} : memref<64x32xf32, #tpu.memory_space<vmem>>, vector<64x32xf32>,
    %35 = arith.addf %2, %28 : vector<64x16xf32>
    %c0_27 = arith.constant 0 : index
    %c0_28 = arith.constant 0 : index
    %36 = vector.load %arg13[%c0_27, %c0_28] : memref<64x16xf32, #tpu.memory_space<vmem>>, vector<64x16xf32>
    tpu.vector_store %arg13[%c0_27, %c0_28], %35 {strides = array<i32>} : memref<64x16xf32, #tpu.memory_space<vmem>>, vector<64x16xf32>,
    %37 = arith.addf %3, %32 : vector<64x32xf32>
    %c0_29 = arith.constant 0 : index
    %c0_30 = arith.constant 0 : index
    %38 = vector.load %arg14[%c0_29, %c0_30] : memref<64x32xf32, #tpu.memory_space<vmem>>, vector<64x32xf32>
    tpu.vector_store %arg14[%c0_29, %c0_30], %37 {strides = array<i32>} : memref<64x32xf32, #tpu.memory_space<vmem>>, vector<64x32xf32>,
    %39 = vector.extract_strided_slice %16 {offsets = [0, 0], sizes = [8, 32], strides = [1, 1]} : vector<8x64xf32> to vector<8x32xf32>
    %40 = vector.extract_strided_slice %16 {offsets = [0, 32], sizes = [8, 32], strides = [1, 1]} : vector<8x64xf32> to vector<8x32xf32>
    %cst_31 = arith.constant 1.000000e+00 : f32
    %41 = vector.broadcast %cst_31 : f32 to vector<8x32xf32>
    %42 = arith.subf %41, %1 : vector<8x32xf32>
    %43 = arith.mulf %39, %42 : vector<8x32xf32>
    %cst_32 = arith.constant 1.000000e+00 : f32
    %44 = vector.broadcast %cst_32 : f32 to vector<8x32xf32>
    %45 = arith.subf %44, %40 : vector<8x32xf32>
    %46 = arith.mulf %45, %1 : vector<8x32xf32>
    %47 = arith.addf %43, %46 : vector<8x32xf32>
    %c0_33 = arith.constant 0 : index
    %c0_34 = arith.constant 0 : index
    %48 = vector.load %arg10[%c0_33, %c0_34] : memref<8x32xf32, #tpu.memory_space<vmem>>, vector<8x32xf32>
    tpu.vector_store %arg10[%c0_33, %c0_34], %47 {strides = array<i32>} : memref<8x32xf32, #tpu.memory_space<vmem>>, vector<8x32xf32>,
    %c0_35 = arith.constant 0 : index
    %c0_36 = arith.constant 0 : index
    %49 = vector.load %arg5[%c0_35, %c0_36] : memref<16x32xf32, #tpu.memory_space<vmem>>, vector<16x32xf32>
    %cst_37 = arith.constant dense<0.000000e+00> : vector<8x16xf32>
    %50 = tpu.matmul %47, %49, %cst_37 {dimension_numbers = #tpu.dot_dimension_numbers<[1], [1], [0], [0], [0, 0, 1, 0], [], []>} : vector<8x32xf32>, vector<16x32xf32>, vector<8x16xf32> -> vector<8x16xf32>
    %c0_38 = arith.constant 0 : index
    %c0_39 = arith.constant 0 : index
    %51 = vector.load %arg6[%c0_38, %c0_39] : memref<1x16xf32, #tpu.memory_space<vmem>>, vector<1x16xf32>
    %52 = vector.broadcast %51 : vector<1x16xf32> to vector<8x16xf32>
    %53 = arith.addf %50, %52 : vector<8x16xf32>
    %c0_40 = arith.constant 0 : index
    %c0_41 = arith.constant 0 : index
    %54 = vector.load %arg9[%c0_40, %c0_41] : memref<8x16xf32, #tpu.memory_space<vmem>>, vector<8x16xf32>
    tpu.vector_store %arg9[%c0_40, %c0_41], %53 {strides = array<i32>} : memref<8x16xf32, #tpu.memory_space<vmem>>, vector<8x16xf32>,
    return
  }
}

</mosaic_0001>

<bundles_post_ra>
// kernel: flipflop_forward.1
= control target key start
LH: loop header
LB: loop body
LE: loop exit
PB: predicated region body
PF: predicated region fallthrough
CT: control target
= control target key end

     0   :  { %20 = vsyncpa [#allocation3], 0  ;;  %vm74_vm0 = vcmask 261120   ;;  %vm122_vm1 = vcmask 130048   ;;  %s645_s27 = smov 32   ;;  %s1083_s0 = inlined_call_operand.vmem [shape: f32[8,16], index: 0, kind: input, shape index: {}]   ;;  %s1084_s1 = inlined_call_operand.vmem [shape: f32[8,32], index: 1, kind: input, shape index: {}]   ;;  %s1085_s2 = inlined_call_operand.vmem [shape: f32[64,16], index: 2, kind: input, shape index: {}, may-alias: {2,13}]   ;;  %s1086_s3 = inlined_call_operand.vmem [shape: f32[64,32], index: 3, kind: input, shape index: {}, may-alias: {3,14}]   ;;  %s1087_s4 = inlined_call_operand.vmem [shape: f32[1,64], index: 4, kind: input, shape index: {}]   ;;  %s1088_s5 = inlined_call_operand.vmem [shape: f32[16,32], index: 5, kind: input, shape index: {}]   ;;  %s1089_s6 = inlined_call_operand.vmem [shape: f32[1,16], index: 6, kind: input, shape index: {}]   ;;  %s1090_s7 = inlined_call_operand.vmem [shape: f32[64,16], index: 7, kind: input, shape index: {}, may-alias: {7,11}]   ;;  %s1091_s8 = inlined_call_operand.vmem [shape: f32[64,32], index: 8, kind: input, shape index: {}, may-alias: {8,12}]   ;;  %s1092_s9 = inlined_call_operand.hbm [shape: f32[8,16], index: 9, kind: output, shape index: {0}]   ;;  %s1093_s10 = inlined_call_operand.hbm [shape: f32[8,32], index: 10, kind: output, shape index: {1}]   ;;  %s1094_s11 = inlined_call_operand.vmem [shape: f32[64,16], index: 11, kind: output, shape index: {2}, may-alias: {7,11}]   ;;  %s1095_s12 = inlined_call_operand.vmem [shape: f32[64,32], index: 12, kind: output, shape index: {3}, may-alias: {8,12}]   ;;  %s1096_s13 = inlined_call_operand.vmem [shape: f32[64,16], index: 13, kind: output, shape index: {4}, may-alias: {2,13}]   ;;  %s1097_s14 = inlined_call_operand.vmem [shape: f32[64,32], index: 14, kind: output, shape index: {5}, may-alias: {3,14}]  }
   0x1   :  { %v727_v0 = vld [vmem:[%s1086_s3 + $0x38] sm:$0xff]  ;;  %v741_v2 = vld [vmem:[%s1086_s3 + $0x30] sm:$0xff]  ;;  %v755_v4 = vld [vmem:[%s1086_s3 + $0x28] sm:$0xff] }
   0x2   :  { %v732_v1 = vld [vmem:[%s1085_s2 + $0x38] sm:$0xff]  ;;  %540 = vmatpush.xpose.msk.msra.mxu0 %vm74_vm0, %v727_v0  ;;  %v746_v3 = vld [vmem:[%s1085_s2 + $0x30] sm:$0xff]  ;;  %v760_v5 = vld [vmem:[%s1084_s1] sm:$0xff] }
   0x3   :  { %549 = vmatpush.xpose.msk.msra.mxu1 %vm122_vm1, %v732_v1  ;;  %v765_v6 = vld [vmem:[%s1085_s2 + $0x28] sm:$0xff]  ;;  %446 = vrot.lane.b32.xlu0 %v760_v5, %s645_s27 }
   0x6   :  { %541 = vmatpush.xpose.msk.msra.mxu0 %vm74_vm0, %v741_v2 }
   0x7   :  { %550 = vmatpush.xpose.msk.msra.mxu1 %vm122_vm1, %v746_v3 }
   0x8   :  { %21 = vsyncpa [#allocation5], 0  ;;  %v775_v7 = vld [vmem:[%s1086_s3 + $0x20] sm:$0xff]  ;;  %v789_v9 = vld [vmem:[%s1086_s3 + $0x18] sm:$0xff]  ;;  %vm194_vm5 = vcmask 523264   ;;  %v209_v51 = vsel %vm74_vm0, %v760_v5, 0.0 }
   0x9   :  { %v780_v8 = vld [vmem:[%s1085_s2 + $0x20] sm:$0xff]  ;;  %v794_v10 = vld [vmem:[%s1085_s2 + $0x18] sm:$0xff]  ;;  %v803_v11 = vld [vmem:[%s1086_s3 + $0x10] sm:$0xff]  ;;  %v210_v52 = vrot.slane %v209_v51, 4  ;;  %vm282_vm7 = vcmask 1040384   ;;  %v443_v61 = vsub.f32 1.0, %v760_v5 }
   0xa   :  { %542 = vmatpush.xpose.msk.msra.mxu0 %vm74_vm0, %v755_v4  ;;  %v808_v12 = vld [vmem:[%s1085_s2 + $0x10] sm:$0xff]  ;;  %v817_v13 = vld [vmem:[%s1086_s3 + $0x8] sm:$0xff]  ;;  %v831_v15 = vld [vmem:[%s1086_s3] sm:$0xff]  ;;  %vm257_vm8 = vcmask 7168   ;;  %s510_s22 = sshll.u32 %s1093_s10, 4  ;;  %s511_s22 = int_to_ptr.hbm [resolvable:$true] %s510_s22 }
   0xb   :  { %551 = vmatpush.xpose.msk.msra.mxu1 %vm122_vm1, %v765_v6  ;;  %v822_v14 = vld [vmem:[%s1085_s2 + $0x8] sm:$0xff]  ;;  %v836_v16 = vld [vmem:[%s1085_s2] sm:$0xff]  ;;  %v211_v55 = vadd.f32 %v210_v52, %v209_v51  ;;  %s648_s2 = smov [#allocation2]  }
   0xc   :  { %v40_v17 = vld [vmem:[%s1083_s0] sm:$0xff]  ;;  %s646_s0 = smov 96  }
   0xd   :  { %v587_v18 = vld [vmem:[%s1087_s4] ss:$0 sm:$0xff]  ;;  %v202_v47 = vsel %vm122_vm1, %v40_v17, 0.0  ;;  %v212_v57 = vrot.slane %v211_v55, 2  ;;  %s497_s4 = sshll.u32 %s648_s2, 4  ;;  %s498_s4 = int_to_ptr.vmem [resolvable:$true] %s497_s4 }
   0xe   :  { %543 = vmatpush.xpose.msk.msra.mxu0 %vm74_vm0, %v775_v7  ;;  %v203_v48 = vrot.slane %v202_v47, 4 }
   0xf   :  { %552 = vmatpush.xpose.msk.msra.mxu1 %vm122_vm1, %v780_v8  ;;  %v213_v58 = vadd.f32 %v212_v57, %v211_v55 }
  0x10   :  { %v204_v49 = vadd.f32 %v203_v48, %v202_v47 }
  0x11   :  { %v214_v59 = vrot.slane %v213_v58, 1 }
  0x12   :  { %544 = vmatpush.xpose.msk.msra.mxu0 %vm74_vm0, %v789_v9  ;;  %v205_v50 = vrot.slane %v204_v49, 2 }
  0x13   :  { %553 = vmatpush.xpose.msk.msra.mxu1 %vm122_vm1, %v794_v10  ;;  %v215_v60 = vadd.f32 %v214_v59, %v213_v58 }
  0x14   :  { %v206_v53 = vadd.f32 %v205_v50, %v204_v49 }
  0x15   :  { %581 = vmatpush.msk.msra.mxu3 %vm282_vm7, %v215_v60 }
  0x16   :  { %545 = vmatpush.xpose.msk.msra.mxu0 %vm74_vm0, %v803_v11  ;;  %v207_v54 = vrot.slane %v206_v53, 1 }
  0x17   :  { %554 = vmatpush.xpose.msk.msra.mxu1 %vm122_vm1, %v808_v12 }
  0x18   :  { %v208_v56 = vadd.f32 %v207_v54, %v206_v53 }
  0x1a   :  { %546 = vmatpush.xpose.msk.msra.mxu0 %vm74_vm0, %v817_v13  ;;  %580 = vmatpush.msk.msra.mxu2 %vm282_vm7, %v208_v56 }
  0x1b   :  { %555 = vmatpush.xpose.msk.msra.mxu1 %vm122_vm1, %v822_v14 }
  0x1e   :  { %547 = vmatpush.xpose.msk.msra.mxu0 %vm74_vm0, %v831_v15 }
  0x1f   :  { %556 = vmatpush.xpose.msk.msra.mxu1 %vm122_vm1, %v836_v16 }
  0x21   :  { %548 = vmatmul.msk.f32.vlgmr.msra.gmra.mxu0 %vm74_vm0, %v760_v5 }
  0x22   :  { %557 = vmatmul.msk.f32.vlgmr.msra.gmra.mxu1 %vm122_vm1, %v40_v17  ;;  %568 = vmatpush.msk.msrb.mxu0 %vm282_vm7, %v215_v60 }
  0x23   :  { %559 = vmatpush.msk.msrb.mxu1 %vm282_vm7, %v208_v56 }
  0x75   :  { %v447_v35 = vpop.permute.xlu0 %446 }
  0x9e   :  { %v119_v19 = vpop.f32.mrf.mxu0 }
  0x9f   :  { %v167_v20 = vpop.f32.mrf.mxu1 }
  0xa0   :  { %v168_v21 = vadd.f32 %v167_v20, %v119_v19  ;;  %v456_v19 = vld [vmem:[%s1088_s5] sm:$0xff] }
  0xa2   :  { %v174_v22 = vadd.f32 %v587_v18, %v168_v21  ;;  %v457_v18 = vld [vmem:[%s1088_s5 + $0x8] sm:$0xff]  ;;  %s647_s5 = smov [#allocation4]  }
  0xa3   :  { %577 = vmatpush.xpose.msk.msra.mxu0 %vm74_vm0, %v457_v18  ;;  %s508_s19 = sshll.u32 %s647_s5, 4  ;;  %s499_s5 = sshll.u32 %s1092_s9, 4  ;;  %s509_s19 = int_to_ptr.vmem [resolvable:$true] %s508_s19  ;;  %s500_s5 = int_to_ptr.hbm [resolvable:$true] %s499_s5 }
  0xa4   :  { %v558_v23 = vmul.f32 -1.442695, %v174_v22 }
  0xa6   :  { %589 = vpow2.f32 %v558_v23 }
  0xa7   :  { %578 = vmatpush.xpose.msk.msra.mxu0 %vm74_vm0, %v456_v19 }
  0xac   :  { %v590_v24 = vpop.eup %589 }
  0xad   :  { %v178_v25 = vadd.f32 1.0, %v590_v24 }
  0xaf   :  { %591 = vrcp.f32 %v178_v25  ;;  %v190_v29 = vand.u32 2147483648, %v178_v25  ;;  %v188_v31 = vand.u32 2147483647, %v178_v25  ;;  %vm184_vm3 = vweird.f32 %v178_v25 }
  0xb1   :  { %v191_v33 = vor.u32 1.1754944e-38, %v190_v29  ;;  %vm189_vm6 = vcmp.eq.f32.partialorder %v188_v31, 8.507059e+37 }
  0xb5   :  { %v592_v26 = vpop.eup %591 }
  0xb6   :  { %v180_v27 = vmul.f32 %v592_v26, %v178_v25  ;;  %vm185_vm2 = vweird.f32 %v592_v26 }
  0xb7   :  { %vm186_vm4 = vmor %vm184_vm3, %vm185_vm2 }
  0xb8   :  { %v181_v28 = vsub.f32 1.0, %v180_v27  ;;  %v58_v27 = vld [vmem:[%s1090_s7] sm:$0xff] }
  0xb9   :  { %v217_v29 = vmul.f32 0.99, %v58_v27 }
  0xba   :  { %v182_v30 = vmul.f32 %v592_v26, %v181_v28  ;;  %v66_v28 = vld [vmem:[%s1091_s8] sm:$0xff] }
  0xbc   :  { %v183_v32 = vadd.f32 %v592_v26, %v182_v30  ;;  %v335_v30 = vmul.f32 0.99, %v66_v28 }
  0xbe   :  { %v187_v34 = vsel %vm186_vm4, %v592_v26, %v183_v32 }
  0xbf   :  { %v192_v36 = vsel %vm189_vm6, %v191_v33, %v187_v34 }
  0xc0   :  { %v445_v37 = vsub.f32 1.0, %v192_v36  ;;  %v195_v38 = vsel %vm194_vm5, %v192_v36, 0.0  ;;  %v444_v62 = vmul.f32 %v443_v61, %v192_v36 }
  0xc1   :  { %v196_v39 = vrot.slane %v195_v38, 4 }
  0xc2   :  { %v449_v40 = vmul.f32 %v447_v35, %v445_v37 }
  0xc3   :  { %v197_v41 = vadd.f32 %v196_v39, %v195_v38 }
  0xc4   :  { %451 = vrot.lane.b32.xlu1 %v449_v40, %s646_s0 }
  0xc5   :  { %v198_v42 = vrot.slane %v197_v41, 2 }
  0xc7   :  { %v199_v43 = vadd.f32 %v198_v42, %v197_v41 }
  0xc9   :  { %v200_v44 = vrot.slane %v199_v43, 1 }
  0xcb   :  { %v201_v45 = vadd.f32 %v200_v44, %v199_v43 }
  0xcd   :  { %v216_v46 = vmul.f32 0.0001546875, %v201_v45 }
  0xcf   :  { %225 = vxpose.xlu0.b32.start.end [1/1] (short) (narrow) %v216_v46, 64 }
 0x136   :  { %v452_v63 = vpop.permute.xlu1 %451 }
 0x137   :  { %v454_v17 = vadd.f32 %v452_v63, %v444_v62 }
 0x139   :  { %455 = vst.msk [vmem:[#allocation4] sm:$0xff] %vm74_vm0, %v454_v17 }
 0x13a   :  { %513 = dma.vmem_to_hbm [thread:$0]  %s509_s19, 128, %s511_s22, [#allocation5]  }
 0x173   :  { %v241_v20 = vpop.trf.xlu0 }
 0x174   :  { %560 = vmatmul.msk.f32.vlgmr.msrb.gmra.mxu1 %vm257_vm8, %v241_v20  ;;  %569 = vmatmul.msk.f32.vlgmr.msrb.gmra.mxu0 %vm257_vm8, %v241_v20 }
 0x17b   :  { %v242_v5 = vpop.trf.xlu0 }
 0x17c   :  { %561 = vmatmul.msk.f32.vlgmr.msra.gmra.mxu2 %vm257_vm8, %v242_v5  ;;  %570 = vmatmul.msk.f32.vlgmr.msra.gmra.mxu3 %vm257_vm8, %v242_v5 }
 0x17d   :  { %579 = vmatmul.msk.f32.vlgmr.msra.gmra.mxu0 %vm74_vm0, %v454_v17 }
 0x183   :  { %v243_v21 = vpop.trf.xlu0 }
 0x184   :  { %562 = vmatmul.msk.f32.gmra.mxu2 %vm257_vm8, %v243_v21  ;;  %571 = vmatmul.msk.f32.gmra.mxu3 %vm257_vm8, %v243_v21 }
 0x18b   :  { %v244_v22 = vpop.trf.xlu0 }
 0x18c   :  { %563 = vmatmul.msk.f32.gmra.mxu2 %vm257_vm8, %v244_v22  ;;  %572 = vmatmul.msk.f32.gmra.mxu3 %vm257_vm8, %v244_v22 }
 0x193   :  { %v245_v23 = vpop.trf.xlu0 }
 0x194   :  { %564 = vmatmul.msk.f32.gmra.mxu2 %vm257_vm8, %v245_v23  ;;  %573 = vmatmul.msk.f32.gmra.mxu3 %vm257_vm8, %v245_v23 }
 0x19b   :  { %v246_v24 = vpop.trf.xlu0 }
 0x19c   :  { %565 = vmatmul.msk.f32.gmra.mxu2 %vm257_vm8, %v246_v24  ;;  %574 = vmatmul.msk.f32.gmra.mxu3 %vm257_vm8, %v246_v24 }
 0x1a3   :  { %v247_v25 = vpop.trf.xlu0 }
 0x1a4   :  { %566 = vmatmul.msk.f32.gmra.mxu2 %vm257_vm8, %v247_v25  ;;  %575 = vmatmul.msk.f32.gmra.mxu3 %vm257_vm8, %v247_v25 }
 0x1ab   :  { %v248_v26 = vpop.trf.xlu0 }
 0x1ac   :  { %567 = vmatmul.msk.f32.gmra.mxu2 %vm257_vm8, %v248_v26  ;;  %576 = vmatmul.msk.f32.gmra.mxu3 %vm257_vm8, %v248_v26 }
 0x1f1   :  { %v303_v31 = vpop.f32.mrf.mxu1  ;;  %v363_v32 = vpop.f32.mrf.mxu0 }
 0x1f2   :  { %v327_v33 = vadd.f32 %v303_v31, %v217_v29  ;;  %v387_v34 = vadd.f32 %v363_v32, %v335_v30 }
 0x1f4   :  { %395 = vst.msk [vmem:[%s1094_s11] sm:$0xff] %vm122_vm1, %v327_v33  ;;  %v411_v35 = vadd.f32 %v327_v33, %v836_v16  ;;  %v427_v36 = vadd.f32 %v387_v34, %v831_v15  ;;  %v588_v16 = vld [vmem:[%s1089_s6] ss:$0 sm:$0xff] }
 0x1f5   :  { %403 = vst.msk [vmem:[%s1095_s12] sm:$0xff] %vm74_vm0, %v387_v34 }
 0x1f6   :  { %419 = vst.msk [vmem:[%s1096_s13] sm:$0xff] %vm122_vm1, %v411_v35 }
 0x1f7   :  { %435 = vst.msk [vmem:[%s1097_s14] sm:$0xff] %vm74_vm0, %v427_v36 }
 0x1fa   :  { %v488_v38 = vpop.f32.mrf.mxu0 }
 0x1fb   :  { %v59_v15 = vld [vmem:[%s1090_s7 + $0x8] sm:$0xff]  ;;  %v489_v39 = vadd.f32 %v588_v16, %v488_v38  ;;  %v60_v46 = vld [vmem:[%s1090_s7 + $0x10] sm:$0xff] }
 0x1fc   :  { %v67_v37 = vld [vmem:[%s1091_s8 + $0x8] sm:$0xff]  ;;  %v218_v40 = vmul.f32 0.99, %v59_v15  ;;  %v68_v47 = vld [vmem:[%s1091_s8 + $0x10] sm:$0xff]  ;;  %v219_v50 = vmul.f32 0.99, %v60_v46 }
 0x1fd   :  { %v336_v41 = vmul.f32 0.99, %v67_v37  ;;  %491 = vst.msk [vmem:[#allocation2] sm:$0xff] %vm122_vm1, %v489_v39  ;;  %v337_v51 = vmul.f32 0.99, %v68_v47 }
 0x1fe   :  { %502 = dma.vmem_to_hbm [thread:$0]  %s498_s4, 128, %s500_s5, [#allocation3]  }
 0x1ff   :  { %v306_v42 = vpop.f32.mrf.mxu2  ;;  %v366_v43 = vpop.f32.mrf.mxu3 }
 0x200   :  { %v328_v44 = vadd.f32 %v306_v42, %v218_v40  ;;  %v388_v45 = vadd.f32 %v366_v43, %v336_v41 }
 0x202   :  { %396 = vst.msk [vmem:[%s1094_s11 + $0x8] sm:$0xff] %vm122_vm1, %v328_v44  ;;  %v412_v48 = vadd.f32 %v328_v44, %v822_v14  ;;  %v428_v49 = vadd.f32 %v388_v45, %v817_v13 }
 0x203   :  { %404 = vst.msk [vmem:[%s1095_s12 + $0x8] sm:$0xff] %vm74_vm0, %v388_v45 }
 0x204   :  { %420 = vst.msk [vmem:[%s1096_s13 + $0x8] sm:$0xff] %vm122_vm1, %v412_v48 }
 0x205   :  { %436 = vst.msk [vmem:[%s1097_s14 + $0x8] sm:$0xff] %vm74_vm0, %v428_v49 }
 0x207   :  { %v309_v14 = vpop.f32.mrf.mxu2  ;;  %v369_v52 = vpop.f32.mrf.mxu3 }
 0x208   :  { %v329_v13 = vadd.f32 %v309_v14, %v219_v50  ;;  %v389_v53 = vadd.f32 %v369_v52, %v337_v51 }
 0x209   :  { %v61_v54 = vld [vmem:[%s1090_s7 + $0x18] sm:$0xff] }
 0x20a   :  { %v69_v55 = vld [vmem:[%s1091_s8 + $0x18] sm:$0xff]  ;;  %397 = vst.msk [vmem:[%s1094_s11 + $0x10] sm:$0xff] %vm122_vm1, %v329_v13  ;;  %v413_v56 = vadd.f32 %v329_v13, %v808_v12  ;;  %v429_v57 = vadd.f32 %v389_v53, %v803_v11  ;;  %v220_v58 = vmul.f32 0.99, %v61_v54 }
 0x20b   :  { %405 = vst.msk [vmem:[%s1095_s12 + $0x10] sm:$0xff] %vm74_vm0, %v389_v53  ;;  %v338_v59 = vmul.f32 0.99, %v69_v55 }
 0x20c   :  { %421 = vst.msk [vmem:[%s1096_s13 + $0x10] sm:$0xff] %vm122_vm1, %v413_v56 }
 0x20d   :  { %437 = vst.msk [vmem:[%s1097_s14 + $0x10] sm:$0xff] %vm74_vm0, %v429_v57 }
 0x20f   :  { %v312_v12 = vpop.f32.mrf.mxu2  ;;  %v372_v60 = vpop.f32.mrf.mxu3 }
 0x210   :  { %v330_v11 = vadd.f32 %v312_v12, %v220_v58  ;;  %v390_v61 = vadd.f32 %v372_v60, %v338_v59 }
 0x211   :  { %v62_v62 = vld [vmem:[%s1090_s7 + $0x20] sm:$0xff] }
 0x212   :  { %v70_v63 = vld [vmem:[%s1091_s8 + $0x20] sm:$0xff]  ;;  %398 = vst.msk [vmem:[%s1094_s11 + $0x18] sm:$0xff] %vm122_vm1, %v330_v11  ;;  %v414_v17 = vadd.f32 %v330_v11, %v794_v10  ;;  %v430_v18 = vadd.f32 %v390_v61, %v789_v9  ;;  %v221_v19 = vmul.f32 0.99, %v62_v62 }
 0x213   :  { %406 = vst.msk [vmem:[%s1095_s12 + $0x18] sm:$0xff] %vm74_vm0, %v390_v61  ;;  %v339_v20 = vmul.f32 0.99, %v70_v63 }
 0x214   :  { %422 = vst.msk [vmem:[%s1096_s13 + $0x18] sm:$0xff] %vm122_vm1, %v414_v17 }
 0x215   :  { %438 = vst.msk [vmem:[%s1097_s14 + $0x18] sm:$0xff] %vm74_vm0, %v430_v18 }
 0x217   :  { %v315_v10 = vpop.f32.mrf.mxu2  ;;  %v375_v5 = vpop.f32.mrf.mxu3 }
 0x218   :  { %v331_v9 = vadd.f32 %v315_v10, %v221_v19  ;;  %v391_v21 = vadd.f32 %v375_v5, %v339_v20 }
 0x219   :  { %v63_v22 = vld [vmem:[%s1090_s7 + $0x28] sm:$0xff] }
 0x21a   :  { %v71_v23 = vld [vmem:[%s1091_s8 + $0x28] sm:$0xff]  ;;  %399 = vst.msk [vmem:[%s1094_s11 + $0x20] sm:$0xff] %vm122_vm1, %v331_v9  ;;  %v415_v24 = vadd.f32 %v331_v9, %v780_v8  ;;  %v431_v25 = vadd.f32 %v391_v21, %v775_v7  ;;  %v222_v26 = vmul.f32 0.99, %v63_v22 }
 0x21b   :  { %407 = vst.msk [vmem:[%s1095_s12 + $0x20] sm:$0xff] %vm74_vm0, %v391_v21  ;;  %v340_v27 = vmul.f32 0.99, %v71_v23 }
 0x21c   :  { %423 = vst.msk [vmem:[%s1096_s13 + $0x20] sm:$0xff] %vm122_vm1, %v415_v24 }
 0x21d   :  { %439 = vst.msk [vmem:[%s1097_s14 + $0x20] sm:$0xff] %vm74_vm0, %v431_v25 }
 0x21f   :  { %v318_v8 = vpop.f32.mrf.mxu2  ;;  %v378_v28 = vpop.f32.mrf.mxu3 }
 0x220   :  { %v332_v7 = vadd.f32 %v318_v8, %v222_v26  ;;  %v392_v29 = vadd.f32 %v378_v28, %v340_v27 }
 0x221   :  { %v64_v30 = vld [vmem:[%s1090_s7 + $0x30] sm:$0xff] }
 0x222   :  { %v72_v31 = vld [vmem:[%s1091_s8 + $0x30] sm:$0xff]  ;;  %400 = vst.msk [vmem:[%s1094_s11 + $0x28] sm:$0xff] %vm122_vm1, %v332_v7  ;;  %v416_v32 = vadd.f32 %v332_v7, %v765_v6  ;;  %v432_v33 = vadd.f32 %v392_v29, %v755_v4  ;;  %v223_v34 = vmul.f32 0.99, %v64_v30 }
 0x223   :  { %408 = vst.msk [vmem:[%s1095_s12 + $0x28] sm:$0xff] %vm74_vm0, %v392_v29  ;;  %v341_v35 = vmul.f32 0.99, %v72_v31 }
 0x224   :  { %424 = vst.msk [vmem:[%s1096_s13 + $0x28] sm:$0xff] %vm122_vm1, %v416_v32 }
 0x225   :  { %440 = vst.msk [vmem:[%s1097_s14 + $0x28] sm:$0xff] %vm74_vm0, %v432_v33 }
 0x227   :  { %v321_v6 = vpop.f32.mrf.mxu2  ;;  %v381_v36 = vpop.f32.mrf.mxu3 }
 0x228   :  { %v333_v4 = vadd.f32 %v321_v6, %v223_v34  ;;  %v393_v16 = vadd.f32 %v381_v36, %v341_v35 }
 0x229   :  { %v65_v15 = vld [vmem:[%s1090_s7 + $0x38] sm:$0xff] }
 0x22a   :  { %v73_v37 = vld [vmem:[%s1091_s8 + $0x38] sm:$0xff]  ;;  %401 = vst.msk [vmem:[%s1094_s11 + $0x30] sm:$0xff] %vm122_vm1, %v333_v4  ;;  %v417_v38 = vadd.f32 %v333_v4, %v746_v3  ;;  %v433_v39 = vadd.f32 %v393_v16, %v741_v2  ;;  %v224_v40 = vmul.f32 0.99, %v65_v15 }
 0x22b   :  { %409 = vst.msk [vmem:[%s1095_s12 + $0x30] sm:$0xff] %vm74_vm0, %v393_v16  ;;  %v342_v41 = vmul.f32 0.99, %v73_v37 }
 0x22c   :  { %425 = vst.msk [vmem:[%s1096_s13 + $0x30] sm:$0xff] %vm122_vm1, %v417_v38 }
 0x22d   :  { %441 = vst.msk [vmem:[%s1097_s14 + $0x30] sm:$0xff] %vm74_vm0, %v433_v39 }
 0x22f   :  { %v324_v3 = vpop.f32.mrf.mxu2  ;;  %v384_v42 = vpop.f32.mrf.mxu3 }
 0x230   :  { %v334_v2 = vadd.f32 %v324_v3, %v224_v40  ;;  %v394_v43 = vadd.f32 %v384_v42, %v342_v41 }
 0x232   :  { %402 = vst.msk [vmem:[%s1094_s11 + $0x38] sm:$0xff] %vm122_vm1, %v334_v2  ;;  %v418_v44 = vadd.f32 %v334_v2, %v732_v1  ;;  %v434_v45 = vadd.f32 %v394_v43, %v727_v0 }
 0x233   :  { %410 = vst.msk [vmem:[%s1095_s12 + $0x38] sm:$0xff] %vm74_vm0, %v394_v43 }
 0x234   :  { %426 = vst.msk [vmem:[%s1096_s13 + $0x38] sm:$0xff] %vm122_vm1, %v418_v44 }
 0x235   :  { %442 = vst.msk [vmem:[%s1097_s14 + $0x38] sm:$0xff] %vm74_vm0, %v434_v45 }
 0x236   :  { %641 = dma.done.wait [#allocation3], 128  }
 0x237   :  { %642 = vsyncadd [#allocation3], 4294967168 }
 0x238   :  { %643 = dma.done.wait [#allocation5], 128  }
 0x239   :  { %644 = vsyncadd [#allocation5], 4294967168 }
 0x23a   :  { %538 = vsyncpa [#allocation3], 1 }
 0x23b   :  { %539 = vsyncpa [#allocation5], 1 }

</bundles_post_ra>
